<compile_context>
chip_gen: v6e
topology: v6e:2x2x1
jax: 0.10.0
libtpu: 0.0.40
codegen_flags: <defaults>
</compile_context>

<pallas_src>
import math
from typing import Any, Dict

import jax
import jax.numpy as jnp
from jax.experimental import pallas as pl
from jax.experimental.pallas import tpu as pltpu

_LANE = 128
# ~2 MiB per block → with double-buffered input + output (4 live buffers)
# ≈ 8 MiB VMEM: fits v5e's 16 MiB scoped default and v7x's tighter budget.
_MAX_BLOCK_BYTES = 2 * 1024 * 1024


# ---------------------------------------------------------------------------
# Pallas kernel: identity / pass-through forward of the abstract base class.
# ---------------------------------------------------------------------------
def _identity_copy_kernel(x_ref, o_ref):
    # The base class defines no transformation; reproduce forward semantics
    # exactly: same shape, same dtype, same values.
    o_ref[...] = x_ref[...]


def _sublane_multiple(dtype) -> int:
    """Minimum sublane multiple for a dtype (8 for fp32, 16 bf16, 32 int8)."""
    itemsize = jnp.dtype(dtype).itemsize
    return 8 * max(1, 4 // itemsize)


def _lane_dense_copy(flat: jax.Array, *, alias_input: bool = False) -> jax.Array:
    """Copy a (rows, 128) lane-dense slab through VMEM with large blocks."""
    rows, lanes = flat.shape
    assert lanes == _LANE, lanes
    itemsize = jnp.dtype(flat.dtype).itemsize
    sub = _sublane_multiple(flat.dtype)

    # Largest block (multiple of the sublane tile) under the VMEM budget.
    max_rows = max(sub, (_MAX_BLOCK_BYTES // (_LANE * itemsize)) // sub * sub)
    block_rows = min(rows, max_rows)
    grid = (pl.cdiv(rows, block_rows),)

    return pl.pallas_call(
        _identity_copy_kernel,
        out_shape=jax.ShapeDtypeStruct((rows, _LANE), flat.dtype),
        grid=grid,
        in_specs=[pl.BlockSpec((block_rows, _LANE), lambda i: (i, 0))],
        out_specs=pl.BlockSpec((block_rows, _LANE), lambda i: (i, 0)),
        compiler_params=pltpu.CompilerParams(
            # Lets v7x shard the row axis across its 2 TensorCores; free on
            # v5e/v6e (single TC).
            dimension_semantics=("parallel",)
        ),
        # Only useful when the caller donates `x` (e.g. jit donate_argnums);
        # otherwise XLA inserts a defensive copy and it buys nothing.
        input_output_aliases=({0: 0} if alias_input else {}),
    )(flat)


def base_trajectory_forward(
    x: jax.Array, *, use_pallas: bool = True, alias_input: bool = False
) -> jax.Array:
    """Pallas implementation of BaseTrajectoryModel.forward (identity contract).

    x: (B, T, F) trajectory tensor (any rank works — layout is flattened to a
       lane-dense 2D slab for the copy and restored afterwards).
    """
    if not use_pallas:
        # Best possible "kernel" for an identity contract: no copy at all.
        return x

    total = x.size
    sub = _sublane_multiple(x.dtype)
    align = sub * _LANE

    if total % align == 0:
        # Fast path: exact lane-dense reshape, no padding.
        flat = x.reshape(total // _LANE, _LANE)
        out = _lane_dense_copy(flat, alias_input=alias_input)
        return out.reshape(x.shape)

    # Fallback: pad to a lane-dense alignment, copy, slice back (exact values).
    padded = math.ceil(total / align) * align
    flat1d = jnp.pad(x.reshape(-1), (0, padded - total))
    out = _lane_dense_copy(flat1d.reshape(padded // _LANE, _LANE))
    return out.reshape(-1)[:total].reshape(x.shape)


# ---------------------------------------------------------------------------
# JAX-side analogue of the (abstract) nn.Module.
# ---------------------------------------------------------------------------
class BaseTrajectoryModelPallas:
    """JAX/Pallas analogue of BaseTrajectoryModel.

    The PyTorch class is abstract: `forward` and `generate` carry no concrete
    math in the base class.  `forward` here is the shape/dtype/value-preserving
    identity (lane-dense Pallas copy, or a zero-cost pass-through); `generate`
    remains unimplemented by design.
    """

    def __init__(self, config: Dict[str, Any]):
        self.config = dict(config)

    def forward(self, x: jax.Array, *args, **kwargs) -> jax.Array:
        # TODO(synk): abstract in the reference module — concrete subclasses
        # (e.g. VAE/diffusion trajectory models) would add real compute here.
        return base_trajectory_forward(x, use_pallas=True)

    def generate(self, conditions: Dict[str, jax.Array], n_samples: int) -> jax.Array:
        # TODO(synk): abstract in the reference module; no defined semantics to port.
        raise NotImplementedError("generate() is abstract in BaseTrajectoryModel")

    def get_config(self) -> Dict[str, Any]:
        return dict(self.config)


# ---------------------------------------------------------------------------
# Demo / smoke test.
# ---------------------------------------------------------------------------
if __name__ == "__main__":
    key = jax.random.PRNGKey(0)

    # Lane-dense-alignable trajectory batch: B*T*F = 1024 elements → fast path.
    B, T, F = 2, 8, 64
    x = jax.random.normal(key, (B, T, F), dtype=jnp.float32)

    config = {"input_dim": F, "seq_len": T, "model": "base"}
    model = BaseTrajectoryModelPallas(config)

    y = jax.block_until_ready(model.forward(x))
    assert y.shape == x.shape, (y.shape, x.shape)
    assert y.dtype == x.dtype, (y.dtype, x.dtype)
    assert bool(jnp.all(y == x)), "Pallas forward did not preserve values"

    # Unaligned shape (F=4) exercises the pad → copy → slice fallback path.
    x2 = jax.random.normal(jax.random.PRNGKey(0), (2, 8, 4), dtype=jnp.float32)
    y2 = jax.block_until_ready(base_trajectory_forward(x2))
    assert y2.shape == x2.shape and y2.dtype == x2.dtype
    assert bool(jnp.all(y2 == x2)), "fallback path did not preserve values"

    # Zero-copy production path (no kernel launch at all).
    y3 = base_trajectory_forward(x, use_pallas=False)
    assert y3 is x

    assert model.get_config() == config

    print("KERNEL_OK")
</pallas_src>

<mosaic_0001>
module attributes {stable_mosaic.version = 11 : i64} {
  func.func @_identity_copy_kernel(%arg0: i32, %arg1: memref<8x128xf32, #tpu.memory_space<vmem>>, %arg2: memref<8x128xf32, #tpu.memory_space<vmem>>) attributes {dimension_semantics = [#tpu.dimension_semantics<parallel>], iteration_bounds = array<i64: 1>, scalar_prefetch = 0 : i64, scratch_operands = 0 : i64, tpu.core_type = #tpu.core_type<tc>, window_params = [{transform_indices = @transform_0, window_bounds = array<i64: 8, 128>}, {transform_indices = @transform_1, window_bounds = array<i64: 8, 128>}]} {
    %c0 = arith.constant 0 : index
    %c0_0 = arith.constant 0 : index
    %0 = vector.load %arg1[%c0, %c0_0] : memref<8x128xf32, #tpu.memory_space<vmem>>, vector<8x128xf32>
    %c0_1 = arith.constant 0 : index
    %c0_2 = arith.constant 0 : index
    %1 = vector.load %arg2[%c0_1, %c0_2] : memref<8x128xf32, #tpu.memory_space<vmem>>, vector<8x128xf32>
    tpu.vector_store %arg2[%c0_1, %c0_2], %0 {strides = array<i32>} : memref<8x128xf32, #tpu.memory_space<vmem>>, vector<8x128xf32>,
    return
  }
  func.func @transform_0(%arg0: i32) -> (i32, i32) {
    %c0_i32 = arith.constant 0 : i32
    %c0_i32_0 = arith.constant 0 : i32
    return %arg0, %c0_i32 : i32, i32
  }
  func.func @transform_1(%arg0: i32) -> (i32, i32) {
    %c0_i32 = arith.constant 0 : i32
    %c0_i32_0 = arith.constant 0 : i32
    return %arg0, %c0_i32 : i32, i32
  }
}

</mosaic_0001>

<bundles_post_ra>
// kernel: tpu_custom_call.1
= control target key start
LH: loop header
LB: loop body
LE: loop exit
PB: predicated region body
PF: predicated region fallthrough
CT: control target
= control target key end

     0   :  { %6 = vsyncpa [#allocation3], 0  ;;  %s102_s0 = inlined_call_operand.hbm [shape: f32[8,128], index: 0, kind: input, shape index: {}]   ;;  %s103_s1 = inlined_call_operand.hbm [shape: f32[8,128], index: 1, kind: output, shape index: {}]  }
   0x1   :  { %7 = vsyncpa [#allocation4], 0  ;;  %s84_s6 = smov [#allocation2]  }
   0x2   :  { %s14_s7 = sshll.u32 %s84_s6, 4  ;;  %s15_s7 = int_to_ptr.vmem [resolvable:$true] %s14_s7 }
   0x3   :  { %s48_s8 = scalar_lea.vmem %s15_s7, 128  ;;  %p53_p1 = scmp.lt.s32.totalorder %s15_s7, %s15_s7 }
   0x4   :  { %p49_p0 = scmp.ne.s32.totalorder %s15_s7, %s48_s8  ;;  %p54_p2 = scmp.lt.s32.totalorder %s48_s8, %s48_s8 }
   0x6   :  { %p55_p3 = por %p54_p2, %p53_p1 }
   0x8   :  { %p56_p4 = pnand %p55_p3, %p49_p0 }
   0xa   :  { %59 = shalt.err (!%p56_p4)
}
   0xb   :  { %17 = dma.hbm_to_vmem [thread:$0]  %s102_s0, 128, %s15_s7, [#allocation3]  }
   0xc   :  { %80 = dma.done.wait [#allocation3], 128  }
   0xd   :  { %81 = vsyncadd [#allocation3], 4294967168  ;;  %s85_s11 = smov [#allocation5]   ;;  %v21_v0 = vld [vmem:[#allocation2] sm:$0xff] }
   0xe   :  { %s29_s12 = sshll.u32 %s85_s11, 4  ;;  %22 = vst [vmem:[#allocation5] sm:$0xff] %v21_v0  ;;  %s30_s12 = int_to_ptr.vmem [resolvable:$true] %s29_s12 }
   0xf   :  { %s60_s13 = scalar_lea.vmem %s30_s12, 128  ;;  %p65_p6 = scmp.lt.s32.totalorder %s30_s12, %s30_s12 }
  0x10   :  { %p61_p5 = scmp.ne.s32.totalorder %s30_s12, %s60_s13  ;;  %p66_p7 = scmp.lt.s32.totalorder %s60_s13, %s60_s13 }
  0x12   :  { %p67_p8 = por %p66_p7, %p65_p6 }
  0x14   :  { %p68_p9 = pnand %p67_p8, %p61_p5 }
  0x16   :  { %71 = shalt.err (!%p68_p9)
}
  0x17   :  { %32 = dma.vmem_to_hbm [thread:$0]  %s30_s12, 128, %s103_s1, [#allocation4]  }
  0x18   :  { %82 = dma.done.wait [#allocation4], 128  }
  0x19   :  { %83 = vsyncadd [#allocation4], 4294967168 }
  0x1a   :  { %36 = vsyncpa [#allocation3], 1 }
  0x1b   :  { %37 = vsyncpa [#allocation4], 1 }

</bundles_post_ra>
